<compile_context>
chip_gen: v7x
topology: tpu7x:2x2x1
jax: 0.10.0
libtpu: 0.0.40
codegen_flags: <defaults>
</compile_context>

<pallas_src>
import functools
import math

import jax
import jax.numpy as jnp
from jax.experimental import pallas as pl
from jax.experimental.pallas import tpu as pltpu

_NEG_BIG = -1e30  # fill for padded classifier columns


# ---------------------------- BlockSpec helpers ----------------------------

try:  # single-buffering for constant-index weight blocks (halves weight VMEM)
    pl.BlockSpec((8, 128), lambda i: (0, 0), pipeline_mode=pl.Buffered(1))
    _HAS_BUFFERED = True
except Exception:  # older jax without pipeline_mode / Buffered
    _HAS_BUFFERED = False


def _const_spec(shape):
    """BlockSpec for a weight/bias with a constant index map, single-buffered."""
    idx = lambda i: (0,) * len(shape)
    if _HAS_BUFFERED:
        return pl.BlockSpec(shape, idx, pipeline_mode=pl.Buffered(1))
    return pl.BlockSpec(shape, idx)


def _row_tile(M, target=512):
    """Largest row tile (multiple of 16 for bf16 sublane packing, <= target) dividing M."""
    if M <= target:
        return M
    step = 16 if M % 16 == 0 else (8 if M % 8 == 0 else 0)
    if step == 0:
        return M
    t = (target // step) * step
    while t >= step:
        if M % t == 0:
            return t
        t -= step
    return M


_PAR = pltpu.CompilerParams(dimension_semantics=("parallel",))


# ---------------------------- Pallas kernels ----------------------------

def _gelu(h):
    # TODO(synk): HF BERT uses exact erf-gelu; tanh approximation used here.
    return 0.5 * h * (1.0 + jnp.tanh(0.7978845608028654 * (h + 0.044715 * h * h * h)))


def _embed_ln_kernel(w_ref, t_ref, p_ref, g_ref, b_ref, o_ref, *, eps):
    # LayerNorm(word_emb + type_emb + pos_emb); sum & stats in f32, output bf16.
    x = (w_ref[...].astype(jnp.float32) + t_ref[...].astype(jnp.float32)
         + p_ref[...].astype(jnp.float32))
    mu = jnp.mean(x, axis=-1, keepdims=True)
    var = jnp.mean(jnp.square(x - mu), axis=-1, keepdims=True)
    o_ref[...] = ((x - mu) * jax.lax.rsqrt(var + eps) * g_ref[...]
                  + b_ref[...]).astype(o_ref.dtype)


def _layer_kernel(x_ref, msk_ref, wqkv_ref, bqkv_ref, wo_ref, bo_ref,
                  g1_ref, beta1_ref, w1_ref, bb1_ref, w2_ref, bb2_ref,
                  g2_ref, beta2_ref, o_ref, ctx_ref,
                  *, num_heads, head_dim, eps):
    # One full encoder layer for one batch element; nothing leaves VMEM until the
    # final lane-dense (S, D) store.
    x = x_ref[...]                                          # (S, D) bf16
    D = x.shape[1]
    xf = x.astype(jnp.float32)

    # --- fused Q|K|V projection (full-lane MXU matmul); 1/sqrt(Dh) pre-folded into Q ---
    qkv = (jnp.dot(x, wqkv_ref[...], preferred_element_type=jnp.float32)
           + bqkv_ref[...])                                 # (S, 3D) f32
    bias = msk_ref[0]                                       # (1, S) additive key mask

    # --- multi-head self-attention; context assembled in VMEM scratch, read once ---
    # TODO(synk): for S >= 256 tile query rows / online softmax instead of a full (S,S)
    # score tile, and batch heads into one leading-batch-dim dot_general for MXU width.
    for hd in range(num_heads):
        o0 = hd * head_dim
        q = qkv[:, o0:o0 + head_dim].astype(jnp.bfloat16)
        k = qkv[:, D + o0:D + o0 + head_dim].astype(jnp.bfloat16)
        v = qkv[:, 2 * D + o0:2 * D + o0 + head_dim].astype(jnp.bfloat16)
        s = jax.lax.dot_general(q, k, (((1,), (1,)), ((), ())),
                                preferred_element_type=jnp.float32)       # (S, S) f32
        s = s + bias
        m = jnp.max(s, axis=-1, keepdims=True)
        p = jnp.exp(s - m)
        p = p * pl.reciprocal(jnp.sum(p, axis=-1, keepdims=True), approx=True)
        ctx_ref[:, o0:o0 + head_dim] = jnp.dot(
            p.astype(jnp.bfloat16), v,
            preferred_element_type=jnp.float32).astype(jnp.bfloat16)

    # --- Wo projection + residual + LayerNorm1 (residual stream kept f32 in-kernel) ---
    y = (jnp.dot(ctx_ref[...], wo_ref[...], preferred_element_type=jnp.float32)
         + bo_ref[...] + xf)
    mu = jnp.mean(y, axis=-1, keepdims=True)
    var = jnp.mean(jnp.square(y - mu), axis=-1, keepdims=True)
    h1 = (y - mu) * jax.lax.rsqrt(var + eps) * g1_ref[...] + beta1_ref[...]   # f32

    # --- FFN + residual + LayerNorm2 ---
    hh = (jnp.dot(h1.astype(jnp.bfloat16), w1_ref[...],
                  preferred_element_type=jnp.float32) + bb1_ref[...])
    hh = _gelu(hh)
    y2 = (jnp.dot(hh.astype(jnp.bfloat16), w2_ref[...],
                  preferred_element_type=jnp.float32) + bb2_ref[...] + h1)
    mu2 = jnp.mean(y2, axis=-1, keepdims=True)
    var2 = jnp.mean(jnp.square(y2 - mu2), axis=-1, keepdims=True)
    o_ref[...] = ((y2 - mu2) * jax.lax.rsqrt(var2 + eps) * g2_ref[...]
                  + beta2_ref[...]).astype(o_ref.dtype)


def _head_kernel(x_ref, w_ref, b_ref, lbl_ref, logits_ref, yhat_ref, part_ref):
    # Classifier (lane-padded to 128 columns) + argmax + per-tile CE partial sums.
    logits = (jnp.dot(x_ref[...], w_ref[...],
                      preferred_element_type=jnp.float32) + b_ref[...])   # (tm, Lp) f32
    logits_ref[...] = logits.astype(logits_ref.dtype)                     # bf16 writeback
    M, Lp = logits.shape
    col = jax.lax.broadcasted_iota(jnp.int32, (M, Lp), 1)
    mx = jnp.max(logits, axis=-1, keepdims=True)
    # argmax(-1), first maximal index (padded cols sit at -1e30 and never win)
    yhat_ref[...] = jnp.min(jnp.where(logits == mx, col, Lp), axis=-1, keepdims=True)
    # CrossEntropyLoss(ignore_index=-1) partial sums for this row tile
    lbl = lbl_ref[...]                                                     # (tm, 1) int32
    lse = mx + jnp.log(jnp.sum(jnp.exp(logits - mx), axis=-1, keepdims=True))
    picked = jnp.sum(jnp.where(col == lbl, logits, 0.0), axis=-1, keepdims=True)
    valid = (lbl >= 0).astype(jnp.float32)
    nll_sum = jnp.sum((lse - picked) * valid)
    valid_sum = jnp.sum(valid)
    lane = jax.lax.broadcasted_iota(jnp.int32, part_ref.shape, 1)
    part_ref[...] = (jnp.where(lane == 0, nll_sum, 0.0)
                     + jnp.where(lane == 1, valid_sum, 0.0))


# ---------------------------- pallas_call wrappers ----------------------------

def embed_layernorm(word_g, type_g, pos, gamma, beta, B, S, D, eps=1e-12):
    M = B * S
    return pl.pallas_call(
        functools.partial(_embed_ln_kernel, eps=eps),
        out_shape=jax.ShapeDtypeStruct((M, D), jnp.bfloat16),
        grid=(B,),
        in_specs=[pl.BlockSpec((S, D), lambda b: (b, 0)),
                  pl.BlockSpec((S, D), lambda b: (b, 0)),
                  _const_spec((S, D)),       # position embeddings (same every step)
                  _const_spec((1, D)),
                  _const_spec((1, D))],
        out_specs=pl.BlockSpec((S, D), lambda b: (b, 0)),
        compiler_params=_PAR,
    )(word_g, type_g, pos, gamma, beta)


def encoder_layer(h, mask_bias, lyr, B, S, D, H, eps=1e-12):
    M = B * S
    I = lyr["w1"].shape[1]
    Dh = D // H
    return pl.pallas_call(
        functools.partial(_layer_kernel, num_heads=H, head_dim=Dh, eps=eps),
        out_shape=jax.ShapeDtypeStruct((M, D), jnp.bfloat16),
        grid=(B,),
        in_specs=[
            pl.BlockSpec((S, D), lambda b: (b, 0)),          # hidden states
            pl.BlockSpec((1, 1, S), lambda b: (b, 0, 0)),    # additive key mask
            _const_spec((D, 3 * D)),                         # wqkv (single-buffered)
            _const_spec((1, 3 * D)),
            _const_spec((D, D)),                             # wo
            _const_spec((1, D)),
            _const_spec((1, D)),                             # ln1 gamma
            _const_spec((1, D)),                             # ln1 beta
            _const_spec((D, I)),                             # w1
            _const_spec((1, I)),
            _const_spec((I, D)),                             # w2
            _const_spec((1, D)),
            _const_spec((1, D)),                             # ln2 gamma
            _const_spec((1, D)),                             # ln2 beta
        ],
        out_specs=pl.BlockSpec((S, D), lambda b: (b, 0)),
        scratch_shapes=[pltpu.VMEM((S, D), jnp.bfloat16)],   # attention context
        compiler_params=pltpu.CompilerParams(
            dimension_semantics=("parallel",),
            vmem_limit_bytes=48 * 1024 * 1024),
    )(h, mask_bias, lyr["wqkv"], lyr["bqkv"], lyr["wo"], lyr["bo"],
      lyr["ln1_g"], lyr["ln1_b"], lyr["w1"], lyr["b1"], lyr["w2"], lyr["b2"],
      lyr["ln2_g"], lyr["ln2_b"])


def classifier_with_loss(x, w, b, labels):
    M, D = x.shape
    Lp = w.shape[1]
    tm = _row_tile(M)
    nt = M // tm
    return pl.pallas_call(
        _head_kernel,
        out_shape=(jax.ShapeDtypeStruct((M, Lp), jnp.bfloat16),   # padded logits
                   jax.ShapeDtypeStruct((M, 1), jnp.int32),       # argmax
                   jax.ShapeDtypeStruct((nt, Lp), jnp.float32)),  # per-tile CE partials
        grid=(nt,),
        in_specs=[pl.BlockSpec((tm, D), lambda i: (i, 0)),
                  _const_spec((D, Lp)),
                  _const_spec((1, Lp)),
                  pl.BlockSpec((tm, 1), lambda i: (i, 0))],
        out_specs=(pl.BlockSpec((tm, Lp), lambda i: (i, 0)),
                   pl.BlockSpec((tm, 1), lambda i: (i, 0)),
                   pl.BlockSpec((1, Lp), lambda i: (i, 0))),
        compiler_params=_PAR,          # per-tile partials -> grid stays parallel
    )(x, w, b, labels)


# ---------------------------- parameters & forward ----------------------------

def init_params(key, cfg):
    D, I, V, L = cfg["hidden"], cfg["inter"], cfg["vocab"], cfg["labels"]
    H = cfg["heads"]
    Dh = D // H
    Lp = 128                                      # lane-dense classifier width
    kit = iter(jax.random.split(key, 8 + 8 * cfg["layers"]))

    def nrm(shape):
        return 0.02 * jax.random.normal(next(kit), shape, dtype=jnp.float32)

    scale = 1.0 / math.sqrt(Dh)                   # folded into Q weight AND Q bias
    fc_w = jnp.zeros((D, Lp), jnp.float32).at[:, :L].set(nrm((D, L)))
    fc_b = jnp.full((1, Lp), _NEG_BIG, jnp.float32).at[:, :L].set(0.0)

    params = {
        "word_emb": nrm((V, D)).astype(jnp.bfloat16),
        "pos_emb": nrm((cfg["max_pos"], D)).astype(jnp.bfloat16),
        "type_emb": nrm((cfg["types"], D)).astype(jnp.bfloat16),
        "emb_ln_g": jnp.ones((1, D), jnp.float32),
        "emb_ln_b": jnp.zeros((1, D), jnp.float32),
        "fc_w": fc_w.astype(jnp.bfloat16),        # nn.Linear(hidden, L), (in, out), lane-padded
        "fc_b": fc_b,
        "layers": [],
    }
    for _ in range(cfg["layers"]):
        wq, wk, wv = nrm((D, D)), nrm((D, D)), nrm((D, D))
        bq, bk, bv = (jnp.zeros((1, D), jnp.float32),) * 3
        params["layers"].append({
            "wqkv": jnp.concatenate([wq * scale, wk, wv], axis=1).astype(jnp.bfloat16),
            "bqkv": jnp.concatenate([bq * scale, bk, bv], axis=1),   # scale folded into Q bias too
            "wo": nrm((D, D)).astype(jnp.bfloat16), "bo": jnp.zeros((1, D), jnp.float32),
            "ln1_g": jnp.ones((1, D), jnp.float32), "ln1_b": jnp.zeros((1, D), jnp.float32),
            "w1": nrm((D, I)).astype(jnp.bfloat16), "b1": jnp.zeros((1, I), jnp.float32),
            "w2": nrm((I, D)).astype(jnp.bfloat16), "b2": jnp.zeros((1, D), jnp.float32),
            "ln2_g": jnp.ones((1, D), jnp.float32), "ln2_b": jnp.zeros((1, D), jnp.float32),
        })
    return params


def net_forward(params, cfg, x, inp_msk, seg_id, y=None):
    B, S = x.shape
    D, H, L = cfg["hidden"], cfg["heads"], cfg["labels"]
    M = B * S

    # --- BERT embeddings: gathers are plain-JAX glue (bf16); sum + LN fused in Pallas ---
    word_g = params["word_emb"][x].reshape(M, D)
    type_g = params["type_emb"][seg_id].reshape(M, D)
    pos = params["pos_emb"][:S]
    h = embed_layernorm(word_g, type_g, pos,
                        params["emb_ln_g"], params["emb_ln_b"], B, S, D)

    # additive key-padding mask, (B, 1, S)
    mask_bias = ((1.0 - inp_msk.astype(jnp.float32)) * -10000.0).reshape(B, 1, S)

    # --- encoder: one fused pallas_call per layer (no activation HBM round trips) ---
    for lyr in params["layers"]:
        h = encoder_layer(h, mask_bias, lyr, B, S, D, H)

    enc = h.astype(jnp.float32).reshape(B, S, D)
    # eval / no_grad branch of the module: dropout is identity.
    # TODO(synk): training-mode dropout (p=0.1) not implemented.

    labels2d = (y if y is not None
                else jnp.full((B, S), -1, jnp.int32)).reshape(M, 1).astype(jnp.int32)
    logits_p, yhat2d, part = classifier_with_loss(h, params["fc_w"], params["fc_b"],
                                                  labels2d)
    logits = logits_p[:, :L].astype(jnp.float32).reshape(B, S, L)

    if y is None:
        return logits

    y_hat = yhat2d.reshape(B, S)
    # mean over non-ignored tokens (nan if none, matching torch behaviour)
    loss = jnp.sum(part[:, 0]) / jnp.sum(part[:, 1])
    return enc, logits, y, y_hat, loss


# ---------------------------- demo ----------------------------

if __name__ == "__main__":
    # scaled-down BERT config (bert-base would be hidden=768, 12 layers, 12 heads)
    cfg = dict(vocab=64, hidden=128, layers=2, heads=4, inter=512,
               max_pos=16, types=2, labels=3)
    B, S = 2, 8

    root = jax.random.PRNGKey(0)
    kp, kx, ky = jax.random.split(root, 3)
    params = init_params(kp, cfg)

    x = jax.random.randint(kx, (B, S), 0, cfg["vocab"], dtype=jnp.int32)
    inp_msk = jnp.concatenate(
        [jnp.ones((B, 6), jnp.int32), jnp.zeros((B, 2), jnp.int32)], axis=1)
    seg_id = jnp.zeros((B, S), jnp.int32)
    y = jax.random.randint(ky, (B, S), -1, cfg["labels"], dtype=jnp.int32)  # -1 = ignore_index

    enc, logits, y_out, y_hat, loss = net_forward(params, cfg, x, inp_msk, seg_id, y)
    jax.block_until_ready((enc, logits, y_hat, loss))

    assert enc.shape == (B, S, cfg["hidden"])
    assert logits.shape == (B, S, cfg["labels"])
    assert y_hat.shape == (B, S)
    assert loss.shape == ()
    print("KERNEL_OK")
</pallas_src>

<mosaic_0001>
module attributes {stable_mosaic.version = 11 : i64} {
  func.func @_embed_ln_kernel(%arg0: i32, %arg1: memref<8x128xbf16, #tpu.memory_space<vmem>>, %arg2: memref<8x128xbf16, #tpu.memory_space<vmem>>, %arg3: memref<8x128xbf16, #tpu.memory_space<vmem>>, %arg4: memref<1x128xf32, #tpu.memory_space<vmem>>, %arg5: memref<1x128xf32, #tpu.memory_space<vmem>>, %arg6: memref<8x128xbf16, #tpu.memory_space<vmem>>) attributes {dimension_semantics = [#tpu.dimension_semantics<parallel>], iteration_bounds = array<i64: 2>, scalar_prefetch = 0 : i64, scratch_operands = 0 : i64, tpu.core_type = #tpu.core_type<tc>, window_params = [{transform_indices = @transform_0, window_bounds = array<i64: 8, 128>}, {transform_indices = @transform_1, window_bounds = array<i64: 8, 128>}, {pipeline_mode = #tpu.pipeline_mode<synchronous>, transform_indices = @transform_2, window_bounds = array<i64: 8, 128>}, {pipeline_mode = #tpu.pipeline_mode<synchronous>, transform_indices = @transform_3, window_bounds = array<i64: 1, 128>}, {pipeline_mode = #tpu.pipeline_mode<synchronous>, transform_indices = @transform_4, window_bounds = array<i64: 1, 128>}, {transform_indices = @transform_5, window_bounds = array<i64: 8, 128>}]} {
    %c0 = arith.constant 0 : index
    %c0_0 = arith.constant 0 : index
    %0 = vector.load %arg1[%c0, %c0_0] : memref<8x128xbf16, #tpu.memory_space<vmem>>, vector<8x128xbf16>
    %1 = arith.extf %0 : vector<8x128xbf16> to vector<8x128xf32>
    %c0_1 = arith.constant 0 : index
    %c0_2 = arith.constant 0 : index
    %2 = vector.load %arg2[%c0_1, %c0_2] : memref<8x128xbf16, #tpu.memory_space<vmem>>, vector<8x128xbf16>
    %3 = arith.extf %2 : vector<8x128xbf16> to vector<8x128xf32>
    %4 = arith.addf %1, %3 : vector<8x128xf32>
    %c0_3 = arith.constant 0 : index
    %c0_4 = arith.constant 0 : index
    %5 = vector.load %arg3[%c0_3, %c0_4] : memref<8x128xbf16, #tpu.memory_space<vmem>>, vector<8x128xbf16>
    %6 = arith.extf %5 : vector<8x128xbf16> to vector<8x128xf32>
    %7 = arith.addf %4, %6 : vector<8x128xf32>
    %cst = arith.constant dense<0.000000e+00> : vector<8xf32>
    %8 = vector.multi_reduction <add>, %7, %cst [1] : vector<8x128xf32> to vector<8xf32>
    %9 = vector.shape_cast %8 : vector<8xf32> to vector<8x1xf32>
    %cst_5 = arith.constant 1.280000e+02 : f32
    %10 = vector.broadcast %cst_5 : f32 to vector<8x1xf32>
    %11 = arith.divf %9, %10 : vector<8x1xf32>
    %12 = vector.broadcast %11 : vector<8x1xf32> to vector<8x128xf32>
    %13 = arith.subf %7, %12 : vector<8x128xf32>
    %14 = arith.mulf %13, %13 : vector<8x128xf32>
    %cst_6 = arith.constant dense<0.000000e+00> : vector<8xf32>
    %15 = vector.multi_reduction <add>, %14, %cst_6 [1] : vector<8x128xf32> to vector<8xf32>
    %16 = vector.shape_cast %15 : vector<8xf32> to vector<8x1xf32>
    %cst_7 = arith.constant 1.280000e+02 : f32
    %17 = vector.broadcast %cst_7 : f32 to vector<8x1xf32>
    %18 = arith.divf %16, %17 : vector<8x1xf32>
    %19 = vector.broadcast %11 : vector<8x1xf32> to vector<8x128xf32>
    %20 = arith.subf %7, %19 : vector<8x128xf32>
    %cst_8 = arith.constant 9.99999996E-13 : f32
    %21 = vector.broadcast %cst_8 : f32 to vector<8x1xf32>
    %22 = arith.addf %18, %21 : vector<8x1xf32>
    %23 = math.rsqrt %22 : vector<8x1xf32>
    %24 = vector.broadcast %23 : vector<8x1xf32> to vector<8x128xf32>
    %25 = arith.mulf %20, %24 : vector<8x128xf32>
    %c0_9 = arith.constant 0 : index
    %c0_10 = arith.constant 0 : index
    %26 = vector.load %arg4[%c0_9, %c0_10] : memref<1x128xf32, #tpu.memory_space<vmem>>, vector<1x128xf32>
    %27 = vector.broadcast %26 : vector<1x128xf32> to vector<8x128xf32>
    %28 = arith.mulf %25, %27 : vector<8x128xf32>
    %c0_11 = arith.constant 0 : index
    %c0_12 = arith.constant 0 : index
    %29 = vector.load %arg5[%c0_11, %c0_12] : memref<1x128xf32, #tpu.memory_space<vmem>>, vector<1x128xf32>
    %30 = vector.broadcast %29 : vector<1x128xf32> to vector<8x128xf32>
    %31 = arith.addf %28, %30 : vector<8x128xf32>
    %32 = arith.truncf %31 : vector<8x128xf32> to vector<8x128xbf16>
    %c0_13 = arith.constant 0 : index
    %c0_14 = arith.constant 0 : index
    %33 = vector.load %arg6[%c0_13, %c0_14] : memref<8x128xbf16, #tpu.memory_space<vmem>>, vector<8x128xbf16>
    tpu.vector_store %arg6[%c0_13, %c0_14], %32 {strides = array<i32>} : memref<8x128xbf16, #tpu.memory_space<vmem>>, vector<8x128xbf16>,
    return
  }
  func.func @transform_0(%arg0: i32) -> (i32, i32) {
    %c0_i32 = arith.constant 0 : i32
    %c0_i32_0 = arith.constant 0 : i32
    return %arg0, %c0_i32 : i32, i32
  }
  func.func @transform_1(%arg0: i32) -> (i32, i32) {
    %c0_i32 = arith.constant 0 : i32
    %c0_i32_0 = arith.constant 0 : i32
    return %arg0, %c0_i32 : i32, i32
  }
  func.func @transform_2(%arg0: i32) -> (i32, i32) {
    %c0_i32 = arith.constant 0 : i32
    %c0_i32_0 = arith.constant 0 : i32
    %c0_i32_1 = arith.constant 0 : i32
    return %c0_i32, %c0_i32_0 : i32, i32
  }
  func.func @transform_3(%arg0: i32) -> (i32, i32) {
    %c0_i32 = arith.constant 0 : i32
    %c0_i32_0 = arith.constant 0 : i32
    %c0_i32_1 = arith.constant 0 : i32
    return %c0_i32, %c0_i32_0 : i32, i32
  }
  func.func @transform_4(%arg0: i32) -> (i32, i32) {
    %c0_i32 = arith.constant 0 : i32
    %c0_i32_0 = arith.constant 0 : i32
    %c0_i32_1 = arith.constant 0 : i32
    return %c0_i32, %c0_i32_0 : i32, i32
  }
  func.func @transform_5(%arg0: i32) -> (i32, i32) {
    %c0_i32 = arith.constant 0 : i32
    %c0_i32_0 = arith.constant 0 : i32
    return %arg0, %c0_i32 : i32, i32
  }
}

</mosaic_0001>

<bundles_post_ra>
// kernel: tpu_custom_call.1
= control target key start
LH: loop header
LB: loop body
LE: loop exit
PB: predicated region body
PF: predicated region fallthrough
CT: control target
= control target key end

     0   :  { %10 = vsyncpa [#allocation3], 0  ;;  %s880_s0 = inlined_call_operand.hbm [shape: bf16[16,128], index: 0, kind: input, shape index: {}]   ;;  %s881_s1 = inlined_call_operand.hbm [shape: bf16[16,128], index: 1, kind: input, shape index: {}]   ;;  %s882_s2 = inlined_call_operand.vmem [shape: bf16[8,128], index: 2, kind: input, shape index: {}]   ;;  %s883_s3 = inlined_call_operand.vmem [shape: f32[1,128], index: 3, kind: input, shape index: {}]   ;;  %s884_s4 = inlined_call_operand.vmem [shape: f32[1,128], index: 4, kind: input, shape index: {}]   ;;  %s885_s5 = inlined_call_operand.hbm [shape: bf16[16,128], index: 5, kind: output, shape index: {}]  }
   0x1   :  { %12 = vsyncpa [#allocation3 + $0x1], 0 }
   0x2   :  { %13 = vsyncpa [#allocation6], 0 }
   0x3   :  { %15 = vsyncpa [#allocation6 + $0x1], 0 }
   0x4   :  { %16 = vsyncpa [#allocation4], 0 }
   0x5   :  { %18 = vsyncpa [#allocation4 + $0x1], 0  ;;  %s657_s18 = smov 0   ;;  %s659_s19 = smov 0  }
   0x6   :  { %s661_s20 = smov 0   ;;  %s663_s21 = smov 0  }
   0x7 LB: > { %s678_s22 = sadd.s32 4294967295, %s622_s21   ;;  %s422_s23 = sadd.s32 4294967294, %s622_s21   ;;  %s622_s21 = sphi %s663_s21, %s904_s21   ;;  %s618_s20 = sphi %s661_s20, %s903_s20   ;;  %s614_s19 = sphi %s659_s19, %s902_s19   ;;  %s610_s18 = sphi %s657_s18, %s901_s18  }
   0x8   : > { %s682_s24 = sadd.s32 1, %s622_s21   ;;  %s31_s25 = sadd.s32 1, %s618_s20 }
   0x9   : > { %s28_s26 = ssub.s32 %s622_s21, %s682_s24  ;;  %p38_p0 = scmp.ne.s32.totalorder %s618_s20, %s614_s19 }
   0xa   : > { %p29_p1 = scmp.eq.s32.totalorder %s28_s26, 0  ;;  %p39_p2 = scmp.eq.s32.totalorder %s622_s21, 0 }
   0xb   : > { %p44_p3 = scmp.ne.s32.totalorder %s614_s19, %s610_s18  ;;  %p45_p4 = scmp.eq.s32.totalorder %s678_s22, 0 }
   0xc   : > { %s694_s27 = scalar_select %p29_p1, %s618_s20, %s31_s25  }
   0xd   : > { %p696_p5 = por %p39_p2, %p38_p0  ;;  %p700_p6 = por %p45_p4, %p44_p3 }
   0xe   : > { %p157_p7 = scmp.eq.s32.totalorder %s678_s22, 1  ;;  %p163_p8 = scmp.eq.s32.totalorder %s422_s23, 1 }
   0xf   : > { %s889_s29 = scalar_select %p700_p6, 1, 0 }
  0x10   : > { %p456_p10 = scmp.lt.s32.totalorder %s622_s21, 2  ;;  %p707_p11 = por %p157_p7, %p38_p0 }
  0x11   : > { %p711_p12 = por %p163_p8, %p44_p3  ;;  %s716_s7 = sand.u32 1, %s618_s20  }
  0x12   : > { %s890_s30 = scalar_select %p707_p11, 1, 0 }
  0x13   : > { %s891_s6 = scalar_select %p711_p12, 1, 0 }
  0x14   : > { %s426_s8 = sshll.u32 %s622_s21, 6  ;;  %s425_s9 = sshll.u32 %s716_s7, 2 }
  0x15   : > { %s725_s12 = scalar_lea.hbm %s880_s0, %s426_s8  ;;  %s196_s13 = scalar_lea.vmem [#allocation2], %s425_s9 }
  0x16   : > { %s203_s14 = sshll.u32 %s196_s13, 4  ;;  %p731_p13 = pnand %p456_p10, %p696_p5  ;;  %s735_s14 = int_to_ptr.vmem [resolvable:$true] %s203_s14 }
  0x17   : > { %s193_s16 = scalar_lea.sflag [#allocation3], %s716_s7  ;;  %s492_s17 = scalar_lea.hbm %s725_s12, 64 }
  0x18   : > { %p493_p2 = scmp.ne.s32.totalorder %s725_s12, %s492_s17  ;;  %p494_p3 = pneg %p731_p13 }
  0x19   : > { %s497_s26 = scalar_lea.hbm %s880_s0, 128  ;;  %p498_p5 = scmp.lt.u32.totalorder %s725_s12, %s880_s0 }
  0x1a   : > { %p495_p4 = pnand %p494_p3, %p493_p2  ;;  %p499_p8 = scmp.lt.u32.totalorder %s497_s26, %s492_s17 }
  0x1b   : > { %p501_p9 = scmp.lt.u32.totalorder %s492_s17, %s725_s12 }
  0x1c   : > { %p496_p7 = pneg %p495_p4  ;;  %p500_p10 = por %p499_p8, %p498_p5 }
  0x1e   : > { %p502_p0 = por %p501_p9, %p500_p10 }
  0x20   : > { %p503_p1 = pnand %p502_p0, %p496_p7 }
  0x22   : > { %506 = shalt.err (!%p503_p1)
}
  0x23   : > { %s507_s11 = scalar_lea.vmem %s735_s14, 64  ;;  %s624_s13 = smov [#allocation2]  }
  0x24   : > { %p508_p2 = scmp.ne.s32.totalorder %s735_s14, %s507_s11  ;;  %s512_s23 = sshll.u32 %s624_s13, 4  ;;  %s513_s23 = int_to_ptr.vmem [resolvable:$false] %s512_s23 }
  0x25   : > { %s514_s25 = scalar_lea.vmem %s513_s23, 128  ;;  %p515_p11 = scmp.lt.s32.totalorder %s735_s14, %s513_s23 }
  0x26   : > { %p510_p4 = pnand %p508_p2, %p494_p3  ;;  %p516_p5 = scmp.lt.s32.totalorder %s514_s25, %s507_s11 }
  0x28   : > { %p511_p12 = pneg %p510_p4  ;;  %p517_p8 = por %p516_p5, %p515_p11 }
  0x2a   : > { %p518_p9 = pnand %p517_p8, %p511_p12 }
  0x2c   : > { %521 = shalt.err (!%p518_p9)
}
  0x2d   : > { %448 = dma.hbm_to_vmem [thread:$0]  (!%p731_p13), %s725_s12, 64, %s735_s14, %s193_s16  }
  0x2e   : > { %p893_p0 = scmp.lt.s32.totalorder %s622_s21, 3  ;;  %p894_p1 = scmp.ge.s32.totalorder %s622_s21, 1 }
  0x2f   : > { %s778_s10 = scalar_lea.hbm %s881_s1, %s426_s8  ;;  %s214_s11 = scalar_lea.vmem [#allocation5], %s425_s9 }
  0x30   : > { %p769_p7 = pnand %p894_p1, %p893_p0  ;;  %s221_s13 = sshll.u32 %s214_s11, 4  ;;  %s222_s13 = int_to_ptr.vmem [resolvable:$true] %s221_s13 }
  0x31   : > { %s211_s12 = scalar_lea.sflag [#allocation6], %s716_s7  ;;  %s522_s14 = scalar_lea.hbm %s778_s10, 64 }
  0x32   : > { %s895_s17 = scalar_select %p769_p7, 1, 0 }
  0x33   : > { %p523_p11 = scmp.ne.s32.totalorder %s778_s10, %s522_s14  ;;  %s527_s8 = scalar_lea.hbm %s881_s1, 128 }
  0x34   : > { %p528_p2 = scmp.lt.u32.totalorder %s778_s10, %s881_s1  ;;  %p529_p4 = scmp.lt.u32.totalorder %s527_s8, %s522_s14 }
  0x35   : > { %p525_p12 = pnand %p523_p11, %p494_p3  ;;  %p531_p8 = scmp.lt.u32.totalorder %s522_s14, %s778_s10 }
  0x36   : > { %p530_p5 = por %p529_p4, %p528_p2 }
  0x37   : > { %p526_p10 = pneg %p525_p12 }
  0x38   : > { %p532_p9 = por %p531_p8, %p530_p5 }
  0x3a   : > { %p533_p0 = pnand %p532_p9, %p526_p10 }
  0x3c   : > { %536 = shalt.err (!%p533_p0)
}
  0x3d   : > { %s537_s7 = scalar_lea.vmem %s222_s13, 64  ;;  %s625_s9 = smov [#allocation5]  }
  0x3e   : > { %p538_p1 = scmp.ne.s32.totalorder %s222_s13, %s537_s7  ;;  %s542_s28 = sshll.u32 %s625_s9, 4  ;;  %s543_s28 = int_to_ptr.vmem [resolvable:$false] %s542_s28 }
  0x3f   : > { %s544_s11 = scalar_lea.vmem %s543_s28, 128  ;;  %p545_p6 = scmp.lt.s32.totalorder %s222_s13, %s543_s28 }
  0x40   : > { %p540_p11 = pnand %p538_p1, %p494_p3  ;;  %p546_p7 = scmp.lt.s32.totalorder %s544_s11, %s537_s7 }
  0x42   : > { %p541_p12 = pneg %p540_p11  ;;  %p547_p2 = por %p546_p7, %p545_p6 }
  0x44   : > { %p548_p4 = pnand %p547_p2, %p541_p12 }
  0x46   : > { %551 = shalt.err (!%p548_p4)
}
  0x47   : > { %451 = dma.hbm_to_vmem [thread:$0]  (!%p731_p13), %s778_s10, 64, %s222_s13, %s211_s12  }
  0x48   : > { %p896_p10 = scmp.ne.s32.totalorder %s895_s17, 0 }
  0x49   : > { %s805_s14 = sand.u32 (!%p896_p10), 1, %s614_s19   ;;  %p897_p6 = scmp.ne.s32.totalorder (!%p896_p10), %s889_s29, 0 }
  0x4a   : > { %230 = sbr.rel (%p896_p10) target bundleno = 418 (0x1a2), region = 40  ;;  %s808_s16 = sshll.u32 (!%p896_p10), %s805_s14, 2 }
  0x4b   : > { %s233_s23 = scalar_lea.sflag (!%p896_p10), [#allocation3], %s805_s14  ;;  %s236_s8 = scalar_lea.vmem (!%p896_p10), [#allocation2], %s808_s16 }
  0x51   : > { %597 = dma.done.wait (%p897_p6), %s233_s23, 64  }
  0x52   : > { %599 = vsyncadd (%p897_p6), %s233_s23, 4294967232  ;;  %s242_s15 = scalar_lea.sflag [#allocation6], %s805_s14  ;;  %s245_s17 = scalar_lea.vmem [#allocation5], %s808_s16 }
  0x53   : > { %601 = dma.done.wait (%p897_p6), %s242_s15, 64  }
  0x54   : > { %603 = vsyncadd (%p897_p6), %s242_s15, 4294967232  ;;  %v277_v0 = vld [vmem:[%s236_s8] sm:$0xf]  ;;  %v279_v1 = vld [vmem:[%s245_s17] sm:$0xf]  ;;  %s436_s7 = sshll.u32 %s678_s22, 6 }
  0x55   : > { %v282_v2 = vld [vmem:[%s882_s2] sm:$0xf]  ;;  %v278_v3 = vunpack.c.l.bf16 %v277_v0  ;;  %v280_v4 = vunpack.c.l.bf16 %v279_v1  ;;  %s276_s9 = scalar_lea.vmem [#allocation7], %s808_s16  ;;  %s836_s8 = scalar_lea.hbm %s885_s5, %s436_s7 }
  0x56   : > { %v283_v5 = vunpack.c.l.bf16 %v282_v2  ;;  %v433_v16 = vld [vmem:[%s883_s3] ss:$0 sm:$0xff]  ;;  %s329_s28 = sshll.u32 %s276_s9, 4  ;;  %s316_s15 = scalar_lea.sflag [#allocation4], %s805_s14  ;;  %s838_s28 = int_to_ptr.vmem [resolvable:$true] %s329_s28 }
  0x57   : > { %v281_v6 = vadd.f32 %v280_v4, %v278_v3  ;;  %v434_v18 = vld [vmem:[%s884_s4] ss:$0 sm:$0xff]  ;;  %s552_s17 = scalar_lea.vmem %s838_s28, 64  ;;  %p898_p3 = scmp.ne.s32.totalorder %s890_s30, 0 }
  0x58   : > { %p553_p13 = scmp.ne.s32.totalorder %s838_s28, %s552_s17  ;;  %s626_s22 = smov [#allocation7]  }
  0x59   : > { %v284_v7 = vadd.f32 %v283_v5, %v281_v6  ;;  %s556_s16 = sshll.u32 %s626_s22, 4  ;;  %s557_s16 = int_to_ptr.vmem [resolvable:$false] %s556_s16 }
  0x5a   : > { %p554_p7 = pnand %p553_p13, %p898_p3  ;;  %s558_s10 = scalar_lea.vmem %s557_s16, 128 }
  0x5b   : > { %285 = vadd.xlane.f32.xlu0 %v284_v7  ;;  %p559_p8 = scmp.lt.s32.totalorder %s838_s28, %s557_s16  ;;  %p560_p9 = scmp.lt.s32.totalorder %s558_s10, %s552_s17 }
  0x5c   : > { %p555_p5 = pneg %p554_p7 }
  0x5d   : > { %p561_p0 = por %p560_p9, %p559_p8 }
  0x5f   : > { %p562_p1 = pnand %p561_p0, %p555_p5 }
  0xe8   : > { %v286_v8 = vpop.xlane.xlu0 %285 }
  0xe9   : > { %v288_v9 = vmul.f32 0.0078125, %v286_v8 }
  0xeb   : > { %v289_v10 = vsub.f32 %v284_v7, %v288_v9 }
  0xed   : > { %v290_v11 = vmul.f32 %v289_v10, %v289_v10 }
  0xef   : > { %291 = vadd.xlane.f32.xlu0 %v290_v11 }
 0x17c   : > { %v292_v12 = vpop.xlane.xlu0 %291 }
 0x17d   : > { %v293_v13 = vmul.f32 0.0078125, %v292_v12 }
 0x17f   : > { %v294_v14 = vadd.f32 1e-12, %v293_v13 }
 0x181   : > { %490 = vrsqrt.f32 %v294_v14 }
 0x18b   : > { %v491_v15 = vpop.eup %490 }
 0x18c   : > { %v296_v17 = vmul.f32 %v491_v15, %v289_v10 }
 0x18e   : > { %v304_v19 = vmul.f32 %v433_v16, %v296_v17 }
 0x190   : > { %v312_v20 = vadd.f32 %v434_v18, %v304_v19 }
 0x192   : > { %v313_v21 = vpack.c.bf16 %v312_v20, %v312_v20 }
 0x194   : > { %314 = vst [vmem:[%s276_s9] sm:$0xf] %v313_v21 }
 0x195   : > { %565 = shalt.err (!%p562_p1)
}
 0x196   : > { %s566_s14 = scalar_lea.hbm %s836_s8, 64  ;;  %s570_s12 = scalar_lea.hbm %s885_s5, 128 }
 0x197   : > { %p567_p11 = scmp.ne.s32.totalorder %s836_s8, %s566_s14  ;;  %p571_p4 = scmp.lt.u32.totalorder %s836_s8, %s885_s5 }
 0x198   : > { %p572_p10 = scmp.lt.u32.totalorder %s570_s12, %s566_s14  ;;  %p574_p13 = scmp.lt.u32.totalorder %s566_s14, %s836_s8 }
 0x199   : > { %p568_p12 = pnand %p567_p11, %p898_p3 }
 0x19a   : > { %p573_p6 = por %p572_p10, %p571_p4 }
 0x19b   : > { %p569_p2 = pneg %p568_p12 }
 0x19c   : > { %p575_p7 = por %p574_p13, %p573_p6 }
 0x19e   : > { %p576_p5 = pnand %p575_p7, %p569_p2 }
 0x1a0   : > { %579 = shalt.err (!%p576_p5)
}
 0x1a1   : > { %443 = dma.vmem_to_hbm [thread:$0]  (%p898_p3), %s838_s28, 64, %s836_s8, %s316_s15  }
 0x1a2 PF: > { %s341_s7 = sand.u32 1, %s610_s18   ;;  %p899_p8 = scmp.ne.s32.totalorder %s891_s6, 0 }
 0x1a3   : > { %p900_p9 = scmp.ge.s32.totalorder %s622_s21, 2  ;;  %s342_s9 = scalar_lea.sflag [#allocation4], %s341_s7 }
 0x1a5   : > { %p453_p0 = pnand %p900_p9, %p899_p8 }
 0x1a7   : > { %605 = dma.done.wait (!%p453_p0), %s342_s9, 64  }
 0x1a8   : > { %607 = vsyncadd (!%p453_p0), %s342_s9, 4294967232  ;;  %p21_p1 = scmp.ge.s32.totalorder %s682_s24, 4   ;;  %s901_s18 = smov %s614_s19 }
 0x1a9   : > { %s902_s19 = smov %s618_s20  ;;  %s903_s20 = smov %s694_s27 }
 0x1aa   : > { %s904_s21 = smov %s682_s24  ;;  %23 = sbr.rel (!%p21_p1) target bundleno = 7 (0x7), region = 98 }
 0x1b1   :  { %347 = vsyncpa [#allocation3], 1 }
 0x1b2   :  { %349 = vsyncpa [#allocation3 + $0x1], 1 }
 0x1b3   :  { %350 = vsyncpa [#allocation6], 1 }
 0x1b4   :  { %352 = vsyncpa [#allocation6 + $0x1], 1 }
 0x1b5   :  { %353 = vsyncpa [#allocation4], 1 }
 0x1b6   :  { %355 = vsyncpa [#allocation4 + $0x1], 1 }

</bundles_post_ra>
